<compile_context>
chip_gen: v5e
topology: v5e:2x2
jax: 0.10.0
libtpu: 0.0.40
codegen_flags: <defaults>
</compile_context>

<pallas_src>
import functools

import jax
import jax.numpy as jnp
from jax.experimental import pallas as pl
from jax.experimental.pallas import tpu as pltpu


def _xavier_uniform(key, fan_in, fan_out, dtype=jnp.float32):
    # gain=1 xavier_uniform, identical formula to torch.nn.init.xavier_uniform_
    limit = (6.0 / (fan_in + fan_out)) ** 0.5
    return jax.random.uniform(key, (fan_in, fan_out), dtype, -limit, limit)


def _round_up(x, m):
    return (x + m - 1) // m * m


def reward_decoder_kernel(x_ref, wbig_ref, w1e_ref, w2_ref, b2_ref,
                          w3_ref, b3_ref, out_ref, *, enc_rows):
    """RewardDecoder forward on one batch tile (batch on the 128-lane axis).

    x_ref    : (f_pad, block_b) packed [state|action|next_state|context|1|0..]
    wbig_ref : (3C+H, f_pad)    fused encoders (+biases) stacked with
                                linear1's context slice (+b1)
    w1e_ref  : (H, 3C)          linear1's hs/ha/hn slice
    w2_ref   : (H, H),  b2_ref : (H, 1)
    w3_ref   : (1, H),  b3_ref : (1, 1)
    out_ref  : (1, block_b)     lane-dense reward row
    """
    f32 = jnp.float32
    x = x_ref[...]

    # One MXU pass over the shared RHS x: rows [0, enc_rows) are the three
    # fused encoders (biases folded via the ones-row of x), the remaining rows
    # are linear1's context contribution + b1.
    big = jnp.dot(wbig_ref[...], x, preferred_element_type=f32)
    henc = jnp.maximum(big[:enc_rows, :], 0.0)      # relu(Wenc @ x + b_enc)
    h1_ctx = big[enc_rows:, :]                      # W1_ctx @ ctx + b1

    h1 = jnp.maximum(
        jnp.dot(w1e_ref[...], henc.astype(w1e_ref.dtype),
                preferred_element_type=f32) + h1_ctx, 0.0)

    h2 = jnp.maximum(
        jnp.dot(w2_ref[...], h1.astype(w2_ref.dtype),
                preferred_element_type=f32) + b2_ref[...], 0.0)

    out_ref[...] = (
        jnp.dot(w3_ref[...], h2.astype(w3_ref.dtype),
                preferred_element_type=f32) + b3_ref[...])


def reward_decoder(state, action, next_state, context, params, *,
                   block_b=2048, compute_dtype=jnp.bfloat16):
    (ws, bs, wa, ba, w1, b1, w2, b2, w3, b3) = params
    B, sd = state.shape
    ad = action.shape[1]
    cd = context.shape[1]
    hd = w2.shape[0]
    assert ws.shape == (sd, cd) and wa.shape == (ad, cd)
    assert w1.shape == (4 * cd, hd) and w3.shape == (hd, 1)

    cdt = compute_dtype
    isz = jnp.finfo(cdt).bits // 8

    # ---- tiling / padding ---------------------------------------------------
    feat = sd + ad + sd + cd
    bias_row = feat                          # spare padding row carrying 1.0
    f_pad = _round_up(feat + 1, 16)          # 16: bf16 sublane packing (also /8)

    b_ceil = _round_up(B, 128)
    block_b = max(128, _round_up(min(block_b, b_ceil), 128))
    # Prefer >=2 grid steps when the batch allows it so the "parallel" axis
    # can shard across both TensorCores on megacore parts (v7x).
    if b_ceil > 128 and pl.cdiv(b_ceil, block_b) < 2:
        block_b = max(128, _round_up(-(-b_ceil // 2), 128))
    b_pad = _round_up(b_ceil, block_b)
    n_steps = pl.cdiv(b_pad, block_b)

    # ---- pack activations: [B, feat] -> [f_pad, b_pad], batch on lanes ------
    # NOTE: this concat/pad/transpose is a separate (un-hidden) XLA pass; the
    # end-to-end fix is to make this feature-major [F, B] layout the producer's
    # calling convention.  Kept here so the kernel is self-contained.
    x = jnp.concatenate([state, action, next_state, context], axis=-1)
    x = jnp.pad(x, ((0, b_pad - B), (0, f_pad - feat)))
    x = x.at[:, bias_row].set(1.0)           # ones column -> bias folding
    x_t = x.T.astype(cdt)                    # (f_pad, b_pad)

    # ---- weights in "compute layout" (transposed, zero-padded, fused) -------
    # wbig rows [0, 3C): fused state/action/state encoders (+biases)
    # wbig rows [3C, 3C+H): linear1's context slice (+ b1)
    wbig = jnp.zeros((3 * cd + hd, f_pad), jnp.float32)
    wbig = wbig.at[0 * cd:1 * cd, 0:sd].set(ws.T)
    wbig = wbig.at[1 * cd:2 * cd, sd:sd + ad].set(wa.T)
    wbig = wbig.at[2 * cd:3 * cd, sd + ad:sd + ad + sd].set(ws.T)
    wbig = wbig.at[0 * cd:1 * cd, bias_row].set(bs[0])
    wbig = wbig.at[1 * cd:2 * cd, bias_row].set(ba[0])
    wbig = wbig.at[2 * cd:3 * cd, bias_row].set(bs[0])
    wbig = wbig.at[3 * cd:, sd + ad + sd:feat].set(w1[3 * cd:4 * cd, :].T)
    wbig = wbig.at[3 * cd:, bias_row].set(b1[0])
    wbig = wbig.astype(cdt)

    w1e = w1[0:3 * cd, :].T.astype(cdt)      # (H, 3C)
    w2t = w2.T.astype(cdt)                   # (H, H)
    b2c = b2.T.astype(jnp.float32)           # (H, 1) -> added to f32 accumulator
    w3t = w3.T.astype(cdt)                   # (1, H)
    b3c = b3.astype(jnp.float32)             # (1, 1)

    # ---- pallas call ----------------------------------------------------------
    def full(a):
        return pl.BlockSpec(a.shape, lambda *_: (0,) * a.ndim)

    # Depth-3 buffering on the single streamed input when there are enough
    # steps to pipeline; weights stay resident via constant index_maps.
    if n_steps >= 3:
        x_spec = pl.BlockSpec((f_pad, block_b), lambda i: (0, i),
                              pipeline_mode=pl.Buffered(3))
    else:
        x_spec = pl.BlockSpec((f_pad, block_b), lambda i: (0, i))

    # VMEM budget: buffered input tiles + f32 intermediates + resident weights.
    est = (3 * f_pad * block_b * isz
           + (3 * cd + 3 * hd + 1) * block_b * 4
           + 2 * (wbig.size + w1e.size + w2t.size + w3t.size) * isz
           + (1 << 20))
    cp_kwargs = dict(dimension_semantics=("parallel",))
    if est > (16 << 20):                      # above v5e's scoped-VMEM default
        cp_kwargs["vmem_limit_bytes"] = int(min(est, 60 << 20))  # < v7x 64 MiB

    out_padded = pl.pallas_call(
        functools.partial(reward_decoder_kernel, enc_rows=3 * cd),
        out_shape=jax.ShapeDtypeStruct((1, b_pad), jnp.float32),
        grid=(n_steps,),
        in_specs=[x_spec, full(wbig), full(w1e), full(w2t), full(b2c),
                  full(w3t), full(b3c)],
        out_specs=pl.BlockSpec((1, block_b), lambda i: (0, i)),
        compiler_params=pltpu.CompilerParams(**cp_kwargs),
    )(x_t, wbig, w1e, w2t, b2c, w3t, b3c)

    # layout plumbing only: drop batch padding, restore (B, 1).
    return out_padded[0, :B].reshape(B, 1)


if __name__ == "__main__":
    # Small shapes consistent with the module's forward.
    B, state_dim, action_dim, context_dim, hidden_dim = 8, 12, 6, 16, 32

    key = jax.random.PRNGKey(0)
    keys = jax.random.split(key, 14)

    # Weights stored as [in, out] (transposed vs torch).  The torch init zeroes
    # biases; we use small nonzero biases here to exercise the bias-folding path.
    ws = _xavier_uniform(keys[0], state_dim, context_dim)
    bs = 0.1 * jax.random.normal(keys[1], (1, context_dim), jnp.float32)
    wa = _xavier_uniform(keys[2], action_dim, context_dim)
    ba = 0.1 * jax.random.normal(keys[3], (1, context_dim), jnp.float32)
    w1 = _xavier_uniform(keys[4], context_dim * 4, hidden_dim)
    b1 = 0.1 * jax.random.normal(keys[5], (1, hidden_dim), jnp.float32)
    w2 = _xavier_uniform(keys[6], hidden_dim, hidden_dim)
    b2 = 0.1 * jax.random.normal(keys[7], (1, hidden_dim), jnp.float32)
    w3 = _xavier_uniform(keys[8], hidden_dim, 1)
    b3 = 0.1 * jax.random.normal(keys[9], (1, 1), jnp.float32)
    params = (ws, bs, wa, ba, w1, b1, w2, b2, w3, b3)

    # Deterministic example inputs.
    state = jax.random.normal(keys[10], (B, state_dim), jnp.float32)
    action = jax.random.normal(keys[11], (B, action_dim), jnp.float32)
    next_state = jax.random.normal(keys[12], (B, state_dim), jnp.float32)
    context = jax.random.normal(keys[13], (B, context_dim), jnp.float32)

    # Pure-JAX reference for correctness check.
    def ref(s, a, ns, c):
        hs = jax.nn.relu(s @ ws + bs)
        ha = jax.nn.relu(a @ wa + ba)
        hn = jax.nn.relu(ns @ ws + bs)
        h = jnp.concatenate([hs, ha, hn, c], axis=-1)
        h = jax.nn.relu(h @ w1 + b1)
        h = jax.nn.relu(h @ w2 + b2)
        return h @ w3 + b3

    expected = ref(state, action, next_state, context)

    # Exact structural check in f32.
    out_f32 = reward_decoder(state, action, next_state, context, params,
                             compute_dtype=jnp.float32)
    out_f32 = jax.block_until_ready(out_f32)
    assert out_f32.shape == (B, 1)
    assert jnp.allclose(out_f32, expected, atol=1e-5, rtol=1e-5), (
        "Pallas kernel (f32) mismatch vs reference")

    # Default fast path: bf16 input/weight stream, f32 accumulation.
    out_bf16 = reward_decoder(state, action, next_state, context, params)
    out_bf16 = jax.block_until_ready(out_bf16)
    assert out_bf16.shape == (B, 1)
    assert jnp.allclose(out_bf16, expected, atol=3e-2, rtol=3e-2), (
        "Pallas kernel (bf16) mismatch vs reference")

    print("KERNEL_OK")
</pallas_src>

<mosaic_0001>
module attributes {stable_mosaic.version = 11 : i64} {
  func.func @reward_decoder_kernel(%arg0: i32, %arg1: memref<48x128xf32, #tpu.memory_space<vmem>>, %arg2: memref<80x48xf32, #tpu.memory_space<vmem>>, %arg3: memref<32x48xf32, #tpu.memory_space<vmem>>, %arg4: memref<32x32xf32, #tpu.memory_space<vmem>>, %arg5: memref<32x1xf32, #tpu.memory_space<vmem>>, %arg6: memref<1x32xf32, #tpu.memory_space<vmem>>, %arg7: memref<1x1xf32, #tpu.memory_space<vmem>>, %arg8: memref<1x128xf32, #tpu.memory_space<vmem>>) attributes {dimension_semantics = [#tpu.dimension_semantics<parallel>], iteration_bounds = array<i64: 1>, scalar_prefetch = 0 : i64, scratch_operands = 0 : i64, tpu.core_type = #tpu.core_type<tc>, window_params = [{transform_indices = @transform_0, window_bounds = array<i64: 48, 128>}, {pipeline_mode = #tpu.pipeline_mode<synchronous>, transform_indices = @transform_1, window_bounds = array<i64: 80, 48>}, {pipeline_mode = #tpu.pipeline_mode<synchronous>, transform_indices = @transform_2, window_bounds = array<i64: 32, 48>}, {pipeline_mode = #tpu.pipeline_mode<synchronous>, transform_indices = @transform_3, window_bounds = array<i64: 32, 32>}, {pipeline_mode = #tpu.pipeline_mode<synchronous>, transform_indices = @transform_4, window_bounds = array<i64: 32, 1>}, {pipeline_mode = #tpu.pipeline_mode<synchronous>, transform_indices = @transform_5, window_bounds = array<i64: 1, 32>}, {pipeline_mode = #tpu.pipeline_mode<synchronous>, transform_indices = @transform_6, window_bounds = array<i64: 1, 1>}, {transform_indices = @transform_7, window_bounds = array<i64: 1, 128>}]} {
    %c0 = arith.constant 0 : index
    %c0_0 = arith.constant 0 : index
    %0 = vector.load %arg1[%c0, %c0_0] : memref<48x128xf32, #tpu.memory_space<vmem>>, vector<48x128xf32>
    %c0_1 = arith.constant 0 : index
    %c0_2 = arith.constant 0 : index
    %1 = vector.load %arg2[%c0_1, %c0_2] : memref<80x48xf32, #tpu.memory_space<vmem>>, vector<80x48xf32>
    %cst = arith.constant dense<0.000000e+00> : vector<80x128xf32>
    %2 = tpu.matmul %1, %0, %cst {dimension_numbers = #tpu.dot_dimension_numbers<[1], [0], [0], [1], [0, 0, 1, 1], [], []>} : vector<80x48xf32>, vector<48x128xf32>, vector<80x128xf32> -> vector<80x128xf32>
    %3 = vector.extract_strided_slice %2 {offsets = [0, 0], sizes = [48, 128], strides = [1, 1]} : vector<80x128xf32> to vector<48x128xf32>
    %cst_3 = arith.constant 0.000000e+00 : f32
    %4 = vector.broadcast %cst_3 : f32 to vector<48x128xf32>
    %5 = arith.maximumf %3, %4 : vector<48x128xf32>
    %6 = vector.extract_strided_slice %2 {offsets = [48, 0], sizes = [32, 128], strides = [1, 1]} : vector<80x128xf32> to vector<32x128xf32>
    %c0_4 = arith.constant 0 : index
    %c0_5 = arith.constant 0 : index
    %7 = vector.load %arg3[%c0_4, %c0_5] : memref<32x48xf32, #tpu.memory_space<vmem>>, vector<32x48xf32>
    %cst_6 = arith.constant dense<0.000000e+00> : vector<32x128xf32>
    %8 = tpu.matmul %7, %5, %cst_6 {dimension_numbers = #tpu.dot_dimension_numbers<[1], [0], [0], [1], [0, 0, 1, 1], [], []>} : vector<32x48xf32>, vector<48x128xf32>, vector<32x128xf32> -> vector<32x128xf32>
    %9 = arith.addf %8, %6 : vector<32x128xf32>
    %cst_7 = arith.constant 0.000000e+00 : f32
    %10 = vector.broadcast %cst_7 : f32 to vector<32x128xf32>
    %11 = arith.maximumf %9, %10 : vector<32x128xf32>
    %c0_8 = arith.constant 0 : index
    %c0_9 = arith.constant 0 : index
    %12 = vector.load %arg4[%c0_8, %c0_9] : memref<32x32xf32, #tpu.memory_space<vmem>>, vector<32x32xf32>
    %cst_10 = arith.constant dense<0.000000e+00> : vector<32x128xf32>
    %13 = tpu.matmul %12, %11, %cst_10 {dimension_numbers = #tpu.dot_dimension_numbers<[1], [0], [0], [1], [0, 0, 1, 1], [], []>} : vector<32x32xf32>, vector<32x128xf32>, vector<32x128xf32> -> vector<32x128xf32>
    %c0_11 = arith.constant 0 : index
    %c0_12 = arith.constant 0 : index
    %14 = vector.load %arg5[%c0_11, %c0_12] : memref<32x1xf32, #tpu.memory_space<vmem>>, vector<32x1xf32>
    %15 = vector.broadcast %14 : vector<32x1xf32> to vector<32x128xf32>
    %16 = arith.addf %13, %15 : vector<32x128xf32>
    %cst_13 = arith.constant 0.000000e+00 : f32
    %17 = vector.broadcast %cst_13 : f32 to vector<32x128xf32>
    %18 = arith.maximumf %16, %17 : vector<32x128xf32>
    %c0_14 = arith.constant 0 : index
    %c0_15 = arith.constant 0 : index
    %19 = vector.load %arg6[%c0_14, %c0_15] : memref<1x32xf32, #tpu.memory_space<vmem>>, vector<1x32xf32>
    %cst_16 = arith.constant dense<0.000000e+00> : vector<1x128xf32>
    %20 = tpu.matmul %19, %18, %cst_16 {dimension_numbers = #tpu.dot_dimension_numbers<[1], [0], [0], [1], [0, 0, 1, 1], [], []>} : vector<1x32xf32>, vector<32x128xf32>, vector<1x128xf32> -> vector<1x128xf32>
    %c0_17 = arith.constant 0 : index
    %c0_18 = arith.constant 0 : index
    %21 = vector.load %arg7[%c0_17, %c0_18] : memref<1x1xf32, #tpu.memory_space<vmem>>, vector<1x1xf32>
    %22 = vector.broadcast %21 : vector<1x1xf32> to vector<1x128xf32>
    %23 = arith.addf %20, %22 : vector<1x128xf32>
    %c0_19 = arith.constant 0 : index
    %c0_20 = arith.constant 0 : index
    %24 = vector.load %arg8[%c0_19, %c0_20] : memref<1x128xf32, #tpu.memory_space<vmem>>, vector<1x128xf32>
    tpu.vector_store %arg8[%c0_19, %c0_20], %23 {strides = array<i32>} : memref<1x128xf32, #tpu.memory_space<vmem>>, vector<1x128xf32>,
    return
  }
  func.func @transform_0(%arg0: i32) -> (i32, i32) {
    %c0_i32 = arith.constant 0 : i32
    %c0_i32_0 = arith.constant 0 : i32
    return %c0_i32, %arg0 : i32, i32
  }
  func.func @transform_1(%arg0: i32) -> (i32, i32) {
    %c0_i32 = arith.constant 0 : i32
    %c0_i32_0 = arith.constant 0 : i32
    %c0_i32_1 = arith.constant 0 : i32
    return %c0_i32, %c0_i32_0 : i32, i32
  }
  func.func @transform_2(%arg0: i32) -> (i32, i32) {
    %c0_i32 = arith.constant 0 : i32
    %c0_i32_0 = arith.constant 0 : i32
    %c0_i32_1 = arith.constant 0 : i32
    return %c0_i32, %c0_i32_0 : i32, i32
  }
  func.func @transform_3(%arg0: i32) -> (i32, i32) {
    %c0_i32 = arith.constant 0 : i32
    %c0_i32_0 = arith.constant 0 : i32
    %c0_i32_1 = arith.constant 0 : i32
    return %c0_i32, %c0_i32_0 : i32, i32
  }
  func.func @transform_4(%arg0: i32) -> (i32, i32) {
    %c0_i32 = arith.constant 0 : i32
    %c0_i32_0 = arith.constant 0 : i32
    %c0_i32_1 = arith.constant 0 : i32
    return %c0_i32, %c0_i32_0 : i32, i32
  }
  func.func @transform_5(%arg0: i32) -> (i32, i32) {
    %c0_i32 = arith.constant 0 : i32
    %c0_i32_0 = arith.constant 0 : i32
    %c0_i32_1 = arith.constant 0 : i32
    return %c0_i32, %c0_i32_0 : i32, i32
  }
  func.func @transform_6(%arg0: i32) -> (i32, i32) {
    %c0_i32 = arith.constant 0 : i32
    %c0_i32_0 = arith.constant 0 : i32
    %c0_i32_1 = arith.constant 0 : i32
    return %c0_i32, %c0_i32_0 : i32, i32
  }
  func.func @transform_7(%arg0: i32) -> (i32, i32) {
    %c0_i32 = arith.constant 0 : i32
    %c0_i32_0 = arith.constant 0 : i32
    return %c0_i32, %arg0 : i32, i32
  }
}

</mosaic_0001>

<bundles_post_ra>
// kernel: tpu_custom_call.1
= control target key start
LH: loop header
LB: loop body
LE: loop exit
PB: predicated region body
PF: predicated region fallthrough
CT: control target
= control target key end

     0   :  { %s516_s0 = inlined_call_operand.vmem [shape: f32[48,128], index: 0, kind: input, shape index: {}]   ;;  %s517_s1 = inlined_call_operand.vmem [shape: f32[80,48], index: 1, kind: input, shape index: {}]   ;;  %s518_s2 = inlined_call_operand.vmem [shape: f32[32,48], index: 2, kind: input, shape index: {}]   ;;  %s519_s3 = inlined_call_operand.vmem [shape: f32[32,32], index: 3, kind: input, shape index: {}]   ;;  %s520_s4 = inlined_call_operand.vmem [shape: f32[32,1], index: 4, kind: input, shape index: {}]   ;;  %s521_s5 = inlined_call_operand.vmem [shape: f32[1,32], index: 5, kind: input, shape index: {}]   ;;  %s522_s6 = inlined_call_operand.<no memory space> [shape: f32[1,1], index: 6, kind: input, shape index: {}]   ;;  %s523_s7 = inlined_call_operand.hbm [shape: f32[1,128], index: 7, kind: output, shape index: {}]  }
   0x1   :  { %v12_v0 = vstv %s522_s6 }
   0x2   :  { %13 = vst [vmem:[#allocation2] sm:$0x1] %v12_v0 }
   0x3   :  { %v34_v1 = vld [vmem:[%s516_s0 + $0x28] sm:$0xff]  ;;  %v33_v2 = vld [vmem:[%s516_s0 + $0x20] sm:$0xff]  ;;  %v32_v3 = vld [vmem:[%s516_s0 + $0x18] sm:$0xff] }
   0x4   :  { %86 = vmatpush.msra.mxu0 %v34_v1  ;;  %319 = vmatpush.msra.mxu2 %v34_v1 }
   0x5   :  { %320 = vmatpush.msra.mxu3 %v34_v1 }
   0x6   :  { %87 = vmatpush.msra.mxu0 %v33_v2  ;;  %321 = vmatpush.msra.mxu2 %v33_v2 }
   0x7   :  { %14 = vsyncpa [#allocation4], 0  ;;  %v31_v4 = vld [vmem:[%s516_s0 + $0x10] sm:$0xff]  ;;  %322 = vmatpush.msra.mxu3 %v33_v2  ;;  %v30_v5 = vld [vmem:[%s516_s0 + $0x8] sm:$0xff]  ;;  %vm45_vm0 = vcmask 392192   ;;  %v362_v36 = vmov 0  }
   0x8   :  { %88 = vmatpush.msra.mxu0 %v32_v3  ;;  %323 = vmatpush.msra.mxu2 %v32_v3  ;;  %v29_v6 = vld [vmem:[%s516_s0] sm:$0xff]  ;;  %v40_v8 = vld [vmem:[%s517_s1 + $0x28] sm:$0xff]  ;;  %v37_v10 = vld [vmem:[%s517_s1 + $0x10] sm:$0xff]  ;;  %vm206_vm1 = vcmask 261120   ;;  %s363_s30 = smov [#allocation3]   ;;  %s291_s10 = sshll.u32 %s523_s7, 4  ;;  %s292_s10 = int_to_ptr.hbm [resolvable:$true] %s291_s10 }
   0x9   :  { %324 = vmatpush.msra.mxu3 %v32_v3  ;;  %v35_v7 = vld [vmem:[%s517_s1] sm:$0xff]  ;;  %v36_v9 = vld [vmem:[%s517_s1 + $0x8] sm:$0xff]  ;;  %v38_v11 = vld [vmem:[%s517_s1 + $0x18] sm:$0xff]  ;;  %334 = vset.pattern.permute.xlu1 %v362_v36  ;;  %s289_s8 = sshll.u32 %s363_s30, 4  ;;  %s290_s8 = int_to_ptr.vmem [resolvable:$true] %s289_s8 }
   0xa   :  { %89 = vmatpush.msra.mxu0 %v31_v4  ;;  %325 = vmatpush.msra.mxu2 %v31_v4  ;;  %v39_v12 = vld [vmem:[%s517_s1 + $0x20] sm:$0xff]  ;;  %v41_v14 = vld [vmem:[%s517_s1 + $0x30] sm:$0xff]  ;;  %v42_v18 = vld [vmem:[%s517_s1 + $0x38] sm:$0xff] }
   0xb   :  { %326 = vmatpush.msra.mxu3 %v31_v4  ;;  %v43_v20 = vld [vmem:[%s517_s1 + $0x40] sm:$0xff]  ;;  %v44_v22 = vld [vmem:[%s517_s1 + $0x48] sm:$0xff]  ;;  %v131_v31 = vld [vmem:[%s518_s2 + $0x10] sm:$0xff]  ;;  %333 = vset.pattern.permute.xlu0 %v362_v36 }
   0xc   :  { %90 = vmatpush.msra.mxu0 %v30_v5  ;;  %327 = vmatpush.msra.mxu2 %v30_v5  ;;  %v129_v29 = vld [vmem:[%s518_s2] sm:$0xff]  ;;  %v130_v30 = vld [vmem:[%s518_s2 + $0x8] sm:$0xff]  ;;  %v132_v32 = vld [vmem:[%s518_s2 + $0x18] sm:$0xff] }
   0xd   :  { %328 = vmatpush.msra.mxu3 %v30_v5  ;;  %335 = vset.pattern.permute.xlu2 %v362_v36  ;;  %v183_v39 = vld [vmem:[%s520_s4 + $0x8] sm:$0xff]  ;;  %v182_v41 = vld [vmem:[%s520_s4] sm:$0xff]  ;;  %v185_v48 = vld [vmem:[%s520_s4 + $0x18] sm:$0xff] }
   0xe   :  { %91 = vmatpush.msra.mxu0 %v29_v6  ;;  %329 = vmatpush.msra.mxu2 %v29_v6  ;;  %v178_v53 = vld [vmem:[%s519_s3] sm:$0xff]  ;;  %v184_v54 = vld [vmem:[%s520_s4 + $0x10] sm:$0xff]  ;;  %v179_v55 = vld [vmem:[%s519_s3 + $0x8] sm:$0xff] }
   0xf   :  { %300 = vmatmul.msk.f32.vlgmr.msra.gmra.mxu0 %vm45_vm0, %v35_v7  ;;  %305 = vmatmul.msk.f32.vlgmr.msra.gmra.mxu2 %vm45_vm0, %v40_v8  ;;  %v180_v56 = vld [vmem:[%s519_s3 + $0x10] sm:$0xff]  ;;  %v181_v57 = vld [vmem:[%s519_s3 + $0x18] sm:$0xff]  ;;  %v253_v59 = vld [vmem:[#allocation2] sm:$0x1] }
  0x10   :  { %330 = vmatpush.msra.mxu3 %v29_v6  ;;  %193 = vperm.xlu1 %334, %v183_v39  }
  0x11   :  { %306 = vmatmul.msk.f32.vlgmr.msra.gmra.mxu3 %vm45_vm0, %v41_v14  ;;  %203 = vperm.xlu0 %333, %v185_v48  }
  0x12   :  { %256 = vperm.xlu2 %335, %v253_v59  }
  0x17   :  { %301 = vmatmul.msk.f32.gmra.mxu0 %vm45_vm0, %v36_v9 }
  0x18   :  { %188 = vperm.xlu1 %334, %v182_v41  }
  0x19   :  { %307 = vmatmul.msk.f32.gmra.mxu3 %vm45_vm0, %v42_v18  ;;  %198 = vperm.xlu0 %333, %v184_v54  }
  0x1f   :  { %302 = vmatmul.msk.f32.gmra.mxu0 %vm45_vm0, %v37_v10 }
  0x21   :  { %308 = vmatmul.msk.f32.gmra.mxu3 %vm45_vm0, %v43_v20 }
  0x27   :  { %303 = vmatmul.msk.f32.gmra.mxu0 %vm45_vm0, %v38_v11  ;;  %v252_v11 = vld [vmem:[%s521_s5] sm:$0x1] }
  0x29   :  { %309 = vmatmul.msk.f32.gmra.mxu3 %vm45_vm0, %v44_v22 }
  0x2f   :  { %304 = vmatmul.msk.f32.gmra.mxu0 %vm45_vm0, %v39_v12 }
  0x6c   :  { %v257_v12 = vpop.permute.xlu2 %256 }
  0x82   :  { %v194_v62 = vpop.permute.xlu1 %193 }
  0x83   :  { %v204_v61 = vpop.permute.xlu0 %203 }
  0x8a   :  { %v189_v4 = vpop.permute.xlu1 %188 }
  0x8b   :  { %v199_v0 = vpop.permute.xlu0 %198 }
  0x8c   :  { %v93_v13 = vpop.f32.mrf.mxu0 }
  0x8d   :  { %v123_v28 = vmax.f32 %v93_v13, 0.0  ;;  %v259_v13 = vperm.slane %v257_v12, 0 }
  0x92   :  { %v108_v15 = vpop.f32.mrf.mxu2 }
  0x93   :  { %v128_v16 = vmax.f32 %v108_v15, 0.0 }
  0x94   :  { %v96_v17 = vpop.f32.mrf.mxu0  ;;  %v111_v33 = vpop.f32.mrf.mxu3 }
  0x95   :  { %155 = vmatpush.msra.mxu1 %v128_v16  ;;  %v124_v27 = vmax.f32 %v96_v17, 0.0 }
  0x9c   :  { %v99_v19 = vpop.f32.mrf.mxu0  ;;  %v114_v35 = vpop.f32.mrf.mxu3 }
  0x9d   :  { %v125_v26 = vmax.f32 %v99_v19, 0.0 }
  0xa4   :  { %v102_v21 = vpop.f32.mrf.mxu0  ;;  %v117_v38 = vpop.f32.mrf.mxu3 }
  0xa5   :  { %v126_v25 = vmax.f32 %v102_v21, 0.0 }
  0xac   :  { %v105_v23 = vpop.f32.mrf.mxu0  ;;  %v120_v42 = vpop.f32.mrf.mxu3 }
  0xad   :  { %v127_v24 = vmax.f32 %v105_v23, 0.0 }
  0xaf   :  { %156 = vmatpush.msra.mxu1 %v127_v24 }
  0xb1   :  { %157 = vmatpush.msra.mxu1 %v126_v25 }
  0xb3   :  { %158 = vmatpush.msra.mxu1 %v125_v26 }
  0xb5   :  { %159 = vmatpush.msra.mxu1 %v124_v27 }
  0xb7   :  { %160 = vmatpush.msra.mxu1 %v123_v28 }
  0xb8   :  { %310 = vmatmul.msk.f32.vlgmr.msra.gmra.mxu1 %vm45_vm0, %v129_v29 }
  0xc0   :  { %311 = vmatmul.msk.f32.gmra.mxu1 %vm45_vm0, %v130_v30 }
  0xc8   :  { %312 = vmatmul.msk.f32.gmra.mxu1 %vm45_vm0, %v131_v31 }
  0xd0   :  { %313 = vmatmul.msk.f32.gmra.mxu1 %vm45_vm0, %v132_v32 }
 0x135   :  { %v162_v34 = vpop.f32.mrf.mxu1 }
 0x136   :  { %v163_v49 = vadd.f32 %v162_v34, %v111_v33 }
 0x138   :  { %v174_v52 = vmax.f32 %v163_v49, 0.0 }
 0x13d   :  { %v165_v37 = vpop.f32.mrf.mxu1 }
 0x13e   :  { %v166_v46 = vadd.f32 %v165_v37, %v114_v35 }
 0x140   :  { %v175_v51 = vmax.f32 %v166_v46, 0.0 }
 0x145   :  { %v168_v40 = vpop.f32.mrf.mxu1 }
 0x146   :  { %v169_v44 = vadd.f32 %v168_v40, %v117_v38 }
 0x148   :  { %v176_v50 = vmax.f32 %v169_v44, 0.0 }
 0x14d   :  { %v171_v43 = vpop.f32.mrf.mxu1 }
 0x14e   :  { %v172_v45 = vadd.f32 %v171_v43, %v120_v42 }
 0x150   :  { %v177_v47 = vmax.f32 %v172_v45, 0.0 }
 0x152   :  { %231 = vmatpush.msrb.mxu2 %v177_v47 }
 0x154   :  { %232 = vmatpush.msrb.mxu2 %v176_v50 }
 0x156   :  { %233 = vmatpush.msrb.mxu2 %v175_v51 }
 0x158   :  { %234 = vmatpush.msrb.mxu2 %v174_v52 }
 0x159   :  { %314 = vmatmul.msk.f32.vlgmr.msrb.gmra.mxu2 %vm206_vm1, %v178_v53 }
 0x161   :  { %315 = vmatmul.msk.f32.gmra.mxu2 %vm206_vm1, %v179_v55 }
 0x169   :  { %316 = vmatmul.msk.f32.gmra.mxu2 %vm206_vm1, %v180_v56 }
 0x171   :  { %317 = vmatmul.msk.f32.gmra.mxu2 %vm206_vm1, %v181_v57 }
 0x1dc   :  { %v236_v58 = vpop.f32.mrf.mxu2 }
 0x1dd   :  { %v237_v7 = vadd.f32 %v236_v58, %v189_v4 }
 0x1df   :  { %v248_v10 = vmax.f32 %v237_v7, 0.0 }
 0x1e4   :  { %v239_v60 = vpop.f32.mrf.mxu2 }
 0x1e5   :  { %v240_v5 = vadd.f32 %v239_v60, %v194_v62 }
 0x1e7   :  { %v249_v9 = vmax.f32 %v240_v5, 0.0 }
 0x1ec   :  { %v242_v63 = vpop.f32.mrf.mxu2 }
 0x1ed   :  { %v243_v2 = vadd.f32 %v242_v63, %v199_v0 }
 0x1ef   :  { %v250_v8 = vmax.f32 %v243_v2, 0.0 }
 0x1f4   :  { %v245_v1 = vpop.f32.mrf.mxu2 }
 0x1f5   :  { %v246_v3 = vadd.f32 %v245_v1, %v204_v61 }
 0x1f7   :  { %v251_v6 = vmax.f32 %v246_v3, 0.0 }
 0x1f9   :  { %275 = vmatpush.msrb.mxu3 %v251_v6 }
 0x1fb   :  { %276 = vmatpush.msrb.mxu3 %v250_v8 }
 0x1fd   :  { %277 = vmatpush.msrb.mxu3 %v249_v9 }
 0x1ff   :  { %278 = vmatpush.msrb.mxu3 %v248_v10 }
 0x200   :  { %318 = vmatmul.msk.f32.vlgmr.msrb.gmra.mxu3 %vm206_vm1, %v252_v11 }
 0x283   :  { %v280_v14 = vpop.f32.mrf.mxu3 }
 0x284   :  { %v281_v15 = vadd.f32 %v280_v14, %v259_v13 }
 0x286   :  { %283 = vst [vmem:[#allocation3] sm:$0x1] %v281_v15 }
 0x287   :  { %294 = dma.vmem_to_hbm [thread:$0]  %s290_s8, 16, %s292_s10, [#allocation4]  }
 0x288   :  { %360 = dma.done.wait [#allocation4], 16  }
 0x289   :  { %361 = vsyncadd [#allocation4], 4294967280 }
 0x28a   :  { %299 = vsyncpa [#allocation4], 1 }

</bundles_post_ra>
